<compile_context>
chip_gen: v7x
topology: tpu7x:2x2x1
jax: 0.10.0
libtpu: 0.0.40
codegen_flags: <defaults>
</compile_context>

<pallas_src>
import functools

import jax
import jax.numpy as jnp
from jax.experimental import pallas as pl
from jax.experimental.pallas import tpu as pltpu


def _mlp_block_kernel(x_ref, w12_ref, w3_ref, o_ref, *, hidden_size):
    # x_ref  : (TM, D)  caller dtype (e.g. f32)
    # w12_ref: (D, 2H)  bf16, packed [d1.weight.T | d2.weight.T]
    # w3_ref : (H, D)   bf16, d3.weight.T
    # o_ref  : (TM, D)  out_dtype
    # Cast activations to the MXU operand dtype INSIDE the kernel (no separate
    # HBM cast pass in the wrapper).
    x = x_ref[...].astype(w12_ref.dtype)

    # Single fused gate/up GEMM: 2H-wide N (256) fills the v6e/v7x MXU tile.
    h = jnp.dot(x, w12_ref[...], preferred_element_type=jnp.float32)       # (TM, 2H) f32
    h1 = h[:, :hidden_size]   # d1(x); H % 128 == 0 -> lane-aligned, free slice
    h2 = h[:, hidden_size:]   # d2(x)

    # SiLU(h1) * h2 in f32 on the VPU/EUP (v5e has no bf16 VPU/EUP path).
    gated = (h1 * jax.nn.sigmoid(h1)) * h2                                  # (TM, H) f32

    # Down-projection; cast to the MXU dtype only at the matmul boundary.
    out = jnp.dot(gated.astype(w3_ref.dtype), w3_ref[...],
                  preferred_element_type=jnp.float32)                       # (TM, D) f32
    o_ref[...] = out.astype(o_ref.dtype)


def pack_mlp_weights(w1_t, w2_t, w3_t, compute_dtype=jnp.bfloat16):
    """Init-time packing: call ONCE (outside the step function / sampling loop)
    so the concat + cast is not rebuilt in HBM on every forward call."""
    w12 = jnp.concatenate([w1_t, w2_t], axis=1).astype(compute_dtype)   # (D, 2H)
    w3c = w3_t.astype(compute_dtype)                                    # (H, D)
    return w12, w3c


def _choose_tm(M, block_m, split_threshold=256):
    """Rows per grid step.

    - Small M (<= split_threshold): one grid step; splitting trivial work is
      pure per-step overhead (~0.35 us / ~600 cycles each).
    - Larger M: at least 2 steps (so v7x's two TensorCores both get work and
      the x/out DMA pipeline overlaps compute), capped at block_m, rounded up
      to the 8-row sublane granule so the BlockSpec satisfies the (8,128) rule.
    """
    if M <= split_threshold:
        return M
    half = (M + 1) // 2
    half = ((half + 7) // 8) * 8
    return min(block_m, half)


def mlp_block(x, w12, w3, *, block_m=512, out_dtype=None):
    """Fused SwiGLU MLP block.

    x   : (M, D) activations, any float dtype (cast to bf16 inside the kernel).
    w12 : (D, 2H) packed bf16 gate/up weights (from pack_mlp_weights).
    w3  : (H, D)  bf16 down-projection weights.
    block_m  : max rows per grid step (sweep 512-1024 on real workloads).
    out_dtype: output dtype; defaults to x.dtype (f32 keeps the PyTorch
               module's semantics; pass jnp.bfloat16 to halve writeback bytes
               if the downstream consumer accepts it).
    """
    M, D = x.shape
    two_h = w12.shape[1]
    H = two_h // 2
    assert w12.shape[0] == D and w3.shape == (H, D)
    # Guard the packed gate/up split: H must land on a lane-tile boundary or
    # the (TM, 2H) f32 intermediate would need a cross-lane relayout.
    assert H % 128 == 0, f"hidden_size ({H}) must be a multiple of 128 (or pad 2H)"
    assert D % 128 == 0, f"input_size ({D}) must be a multiple of 128"

    out_dtype = x.dtype if out_dtype is None else out_dtype
    tm = _choose_tm(M, block_m)
    grid = (pl.cdiv(M, tm),)

    # VMEM budget (v7x has 64 MiB total; keep the scoped limit <= ~48 MiB).
    # x/out blocks are double-buffered by the default pipeline; the weight
    # blocks are grid-invariant (fetched once, ~0.5 MiB) but counted at x2 to
    # stay conservative about the allocator's default double buffering.
    x_bpe = jnp.dtype(x.dtype).itemsize
    w_bpe = jnp.dtype(w12.dtype).itemsize
    o_bpe = jnp.dtype(out_dtype).itemsize
    vmem_limit = 48 * 1024 * 1024
    weight_bytes = (D * two_h + H * D) * w_bpe
    block_bytes = tm * D * (x_bpe + o_bpe)
    vmem_needed = 2 * block_bytes + 2 * weight_bytes
    assert vmem_needed < vmem_limit, (
        f"block plan needs ~{vmem_needed} B VMEM; shrink block_m (tm={tm})")

    # Advisory cost hint for XLA scheduling around the custom call.
    cost = pl.CostEstimate(
        flops=2 * M * D * two_h + 2 * M * H * D + 4 * M * H,
        transcendentals=M * H,
        bytes_accessed=M * D * x_bpe + weight_bytes + M * D * o_bpe,
    )

    kernel = functools.partial(_mlp_block_kernel, hidden_size=H)

    return pl.pallas_call(
        kernel,
        out_shape=jax.ShapeDtypeStruct((M, D), out_dtype),
        grid_spec=pltpu.PrefetchScalarGridSpec(
            num_scalar_prefetch=0,
            grid=grid,
            in_specs=[
                pl.BlockSpec((tm, D), lambda i: (i, 0)),        # x rows, pipelined
                pl.BlockSpec((D, two_h), lambda i: (0, 0)),     # packed w1|w2, grid-invariant
                pl.BlockSpec((H, D), lambda i: (0, 0)),         # w3, grid-invariant
            ],
            out_specs=pl.BlockSpec((tm, D), lambda i: (i, 0)),
        ),
        compiler_params=pltpu.CompilerParams(
            dimension_semantics=("parallel",),
            vmem_limit_bytes=vmem_limit,
        ),
        cost_estimate=cost,
    )(x, w12, w3)


def reference_mlp_block(x, w1_t, w2_t, w3_t, compute_dtype=jnp.bfloat16):
    """Pure-JAX reference with the same dtype policy as the kernel."""
    xc = x.astype(compute_dtype)
    h1 = jnp.dot(xc, w1_t.astype(compute_dtype), preferred_element_type=jnp.float32)
    h2 = jnp.dot(xc, w2_t.astype(compute_dtype), preferred_element_type=jnp.float32)
    gated = (h1 * jax.nn.sigmoid(h1)) * h2
    out = jnp.dot(gated.astype(compute_dtype), w3_t.astype(compute_dtype),
                  preferred_element_type=jnp.float32)
    return out.astype(x.dtype)


if __name__ == "__main__":
    # Shapes from MLPBlock(input_size=640, hidden_size=128).
    input_size = 640
    hidden_size = 128

    key = jax.random.PRNGKey(0)
    kx, kx2, k1, k2, k3 = jax.random.split(key, 5)

    # PyTorch nn.Linear(in, out, bias=False) weight is (out, in); we store the
    # transpose (in, out) so the kernel computes x @ W^T as a row-major matmul.
    def init_w(k, in_f, out_f):
        bound = 1.0 / float(in_f) ** 0.5
        return jax.random.uniform(k, (in_f, out_f), jnp.float32,
                                  minval=-bound, maxval=bound)

    w1_t = init_w(k1, input_size, hidden_size)   # d1.weight.T
    w2_t = init_w(k2, input_size, hidden_size)   # d2.weight.T
    w3_t = init_w(k3, hidden_size, input_size)   # d3.weight.T

    # Init-time weight packing (done once, reused by every call).
    w12, w3c = pack_mlp_weights(w1_t, w2_t, w3_t)

    # 1) Small batch: single grid step (no point splitting 32 rows).
    x_small = jax.random.normal(kx, (32, input_size), dtype=jnp.float32)
    out_small = mlp_block(x_small, w12, w3c)
    jax.block_until_ready(out_small)
    ref_small = reference_mlp_block(x_small, w1_t, w2_t, w3_t)
    assert out_small.shape == x_small.shape and out_small.dtype == x_small.dtype
    assert jnp.allclose(out_small, ref_small, atol=1e-2, rtol=1e-2), float(
        jnp.max(jnp.abs(out_small - ref_small)))

    # 2) Larger batch: >=2 grid steps -> pipelined x/out DMA and both v7x TCs fed.
    x_big = jax.random.normal(kx2, (512, input_size), dtype=jnp.float32)
    out_big = mlp_block(x_big, w12, w3c)
    jax.block_until_ready(out_big)
    ref_big = reference_mlp_block(x_big, w1_t, w2_t, w3_t)
    assert jnp.allclose(out_big, ref_big, atol=1e-2, rtol=1e-2), float(
        jnp.max(jnp.abs(out_big - ref_big)))

    # 3) bf16 output variant (downstream-consumer choice; halves writeback bytes).
    out_bf16 = mlp_block(x_big, w12, w3c, out_dtype=jnp.bfloat16)
    jax.block_until_ready(out_bf16)
    assert out_bf16.dtype == jnp.bfloat16
    assert jnp.allclose(out_bf16.astype(jnp.float32), ref_big, atol=5e-2, rtol=5e-2)

    print("KERNEL_OK")
</pallas_src>

<mosaic_0001>
module attributes {stable_mosaic.version = 11 : i64} {
  func.func @_mlp_block_kernel(%arg0: i32, %arg1: memref<32x640xf32, #tpu.memory_space<vmem>>, %arg2: memref<640x256xbf16, #tpu.memory_space<vmem>>, %arg3: memref<128x640xbf16, #tpu.memory_space<vmem>>, %arg4: memref<32x640xf32, #tpu.memory_space<vmem>>) attributes {dimension_semantics = [#tpu.dimension_semantics<parallel>], iteration_bounds = array<i64: 1>, scalar_prefetch = 0 : i64, scratch_operands = 0 : i64, tpu.core_type = #tpu.core_type<tc>, window_params = [{transform_indices = @transform_0, window_bounds = array<i64: 32, 640>}, {pipeline_mode = #tpu.pipeline_mode<synchronous>, transform_indices = @transform_1, window_bounds = array<i64: 640, 256>}, {pipeline_mode = #tpu.pipeline_mode<synchronous>, transform_indices = @transform_2, window_bounds = array<i64: 128, 640>}, {transform_indices = @transform_3, window_bounds = array<i64: 32, 640>}]} {
    %c0 = arith.constant 0 : index
    %c0_0 = arith.constant 0 : index
    %0 = vector.load %arg1[%c0, %c0_0] : memref<32x640xf32, #tpu.memory_space<vmem>>, vector<32x640xf32>
    %1 = arith.truncf %0 : vector<32x640xf32> to vector<32x640xbf16>
    %c0_1 = arith.constant 0 : index
    %c0_2 = arith.constant 0 : index
    %2 = vector.load %arg2[%c0_1, %c0_2] : memref<640x256xbf16, #tpu.memory_space<vmem>>, vector<640x256xbf16>
    %cst = arith.constant dense<0.000000e+00> : vector<32x256xf32>
    %3 = tpu.matmul %1, %2, %cst {dimension_numbers = #tpu.dot_dimension_numbers<[1], [0], [0], [1], [0, 0, 1, 1], [], []>} : vector<32x640xbf16>, vector<640x256xbf16>, vector<32x256xf32> -> vector<32x256xf32>
    %4 = vector.extract_strided_slice %3 {offsets = [0, 0], sizes = [32, 128], strides = [1, 1]} : vector<32x256xf32> to vector<32x128xf32>
    %5 = vector.extract_strided_slice %3 {offsets = [0, 128], sizes = [32, 128], strides = [1, 1]} : vector<32x256xf32> to vector<32x128xf32>
    %6 = arith.negf %4 : vector<32x128xf32>
    %7 = math.exp %6 : vector<32x128xf32>
    %cst_3 = arith.constant 1.000000e+00 : f32
    %8 = vector.broadcast %cst_3 : f32 to vector<32x128xf32>
    %9 = arith.addf %8, %7 : vector<32x128xf32>
    %10 = arith.divf %8, %9 : vector<32x128xf32>
    %11 = arith.mulf %4, %10 : vector<32x128xf32>
    %12 = arith.mulf %11, %5 : vector<32x128xf32>
    %13 = arith.truncf %12 : vector<32x128xf32> to vector<32x128xbf16>
    %c0_4 = arith.constant 0 : index
    %c0_5 = arith.constant 0 : index
    %14 = vector.load %arg3[%c0_4, %c0_5] : memref<128x640xbf16, #tpu.memory_space<vmem>>, vector<128x640xbf16>
    %cst_6 = arith.constant dense<0.000000e+00> : vector<32x640xf32>
    %15 = tpu.matmul %13, %14, %cst_6 {dimension_numbers = #tpu.dot_dimension_numbers<[1], [0], [0], [1], [0, 0, 1, 1], [], []>} : vector<32x128xbf16>, vector<128x640xbf16>, vector<32x640xf32> -> vector<32x640xf32>
    %c0_7 = arith.constant 0 : index
    %c0_8 = arith.constant 0 : index
    %16 = vector.load %arg4[%c0_7, %c0_8] : memref<32x640xf32, #tpu.memory_space<vmem>>, vector<32x640xf32>
    tpu.vector_store %arg4[%c0_7, %c0_8], %15 {strides = array<i32>} : memref<32x640xf32, #tpu.memory_space<vmem>>, vector<32x640xf32>,
    return
  }
  func.func @transform_0(%arg0: i32) -> (i32, i32) {
    %c0_i32 = arith.constant 0 : i32
    %c0_i32_0 = arith.constant 0 : i32
    return %arg0, %c0_i32 : i32, i32
  }
  func.func @transform_1(%arg0: i32) -> (i32, i32) {
    %c0_i32 = arith.constant 0 : i32
    %c0_i32_0 = arith.constant 0 : i32
    %c0_i32_1 = arith.constant 0 : i32
    return %c0_i32, %c0_i32_0 : i32, i32
  }
  func.func @transform_2(%arg0: i32) -> (i32, i32) {
    %c0_i32 = arith.constant 0 : i32
    %c0_i32_0 = arith.constant 0 : i32
    %c0_i32_1 = arith.constant 0 : i32
    return %c0_i32, %c0_i32_0 : i32, i32
  }
  func.func @transform_3(%arg0: i32) -> (i32, i32) {
    %c0_i32 = arith.constant 0 : i32
    %c0_i32_0 = arith.constant 0 : i32
    return %arg0, %c0_i32 : i32, i32
  }
}

</mosaic_0001>

<bundles_post_ra>
// kernel: tpu_custom_call.1
= control target key start
LH: loop header
LB: loop body
LE: loop exit
PB: predicated region body
PF: predicated region fallthrough
CT: control target
= control target key end

     0   :  { %8 = vsyncpa [#allocation3], 0  ;;  %s1767_s0 = inlined_call_operand.hbm [shape: f32[32,640], index: 0, kind: input, shape index: {}]   ;;  %s1768_s1 = inlined_call_operand.hbm [shape: bf16[640,256], index: 1, kind: input, shape index: {}]   ;;  %s1769_s2 = inlined_call_operand.hbm [shape: bf16[128,640], index: 2, kind: input, shape index: {}]   ;;  %s1770_s3 = inlined_call_operand.hbm [shape: f32[32,640], index: 3, kind: output, shape index: {}]  }
   0x1   :  { %9 = vsyncpa [#allocation6], 0 }
   0x2   :  { %10 = vsyncpa [#allocation4], 0  ;;  %s1676_s12 = smov [#allocation5]   ;;  %s1582_s16 = scalar_lea.hbm %s1768_s1, 10240 }
   0x3   :  { %s28_s13 = sshll.u32 %s1676_s12, 4  ;;  %p1583_p0 = scmp.ne.s32.totalorder %s1768_s1, %s1582_s16  ;;  %s29_s13 = int_to_ptr.vmem [resolvable:$true] %s28_s13 }
   0x4   :  { %p1586_p1 = scmp.lt.u32.totalorder %s1582_s16, %s1768_s1 }
   0x6   :  { %p1588_p2 = pnand %p1586_p1, %p1583_p0 }
   0x8   :  { %1591 = shalt.err (!%p1588_p2)
}
   0x9   :  { %s1592_s21 = scalar_lea.vmem %s29_s13, 10240  ;;  %p1597_p4 = scmp.lt.s32.totalorder %s29_s13, %s29_s13 }
   0xa   :  { %p1593_p3 = scmp.ne.s32.totalorder %s29_s13, %s1592_s21  ;;  %p1598_p5 = scmp.lt.s32.totalorder %s1592_s21, %s1592_s21 }
   0xc   :  { %p1599_p6 = por %p1598_p5, %p1597_p4 }
   0xe   :  { %p1600_p7 = pnand %p1599_p6, %p1593_p3 }
  0x10   :  { %1603 = shalt.err (!%p1600_p7)
}
  0x11   :  { %s1677_s22 = smov 128   ;;  %s1678_s23 = smov 8  }
  0x12   :  { %34 = dma.hbm_to_vmem [thread:$0]  %s1768_s1, 10240, %s29_s13, [#allocation6], %s1677_s22, %s1677_s22, %s1678_s23  }
  0x13   :  { %s1679_s26 = smov [#allocation2]   ;;  %s1604_s30 = scalar_lea.hbm %s1767_s0, 2560 }
  0x14   :  { %s16_s27 = sshll.u32 %s1679_s26, 4  ;;  %p1605_p8 = scmp.ne.s32.totalorder %s1767_s0, %s1604_s30  ;;  %s17_s27 = int_to_ptr.vmem [resolvable:$true] %s16_s27 }
  0x15   :  { %p1608_p9 = scmp.lt.u32.totalorder %s1604_s30, %s1767_s0 }
  0x17   :  { %p1610_p10 = pnand %p1608_p9, %p1605_p8 }
  0x19   :  { %1613 = shalt.err (!%p1610_p10)
}
  0x1a   :  { %s1614_s8 = scalar_lea.vmem %s17_s27, 2560  ;;  %p1619_p12 = scmp.lt.s32.totalorder %s17_s27, %s17_s27 }
  0x1b   :  { %p1615_p11 = scmp.ne.s32.totalorder %s17_s27, %s1614_s8  ;;  %p1620_p13 = scmp.lt.s32.totalorder %s1614_s8, %s1614_s8 }
  0x1d   :  { %p1621_p0 = por %p1620_p13, %p1619_p12 }
  0x1f   :  { %p1622_p1 = pnand %p1621_p0, %p1615_p11 }
  0x21   :  { %1625 = shalt.err (!%p1622_p1)
}
  0x22   :  { %s1680_s1 = smov 640   ;;  %s1681_s9 = smov 40  }
  0x23   :  { %22 = dma.hbm_to_vmem [thread:$0]  %s1767_s0, 2560, %s17_s27, [#allocation3], %s1680_s1, %s1680_s1, %s1681_s9  }
  0x24   :  { %s1682_s12 = smov [#allocation7]   ;;  %s1626_s16 = scalar_lea.hbm %s1769_s2, 5120 }
  0x25   :  { %s40_s13 = sshll.u32 %s1682_s12, 4  ;;  %p1627_p2 = scmp.ne.s32.totalorder %s1769_s2, %s1626_s16  ;;  %s41_s13 = int_to_ptr.vmem [resolvable:$true] %s40_s13 }
  0x26   :  { %p1630_p3 = scmp.lt.u32.totalorder %s1626_s16, %s1769_s2 }
  0x28   :  { %p1632_p4 = pnand %p1630_p3, %p1627_p2 }
  0x2a   :  { %1635 = shalt.err (!%p1632_p4)
}
  0x2b   :  { %s1636_s21 = scalar_lea.vmem %s41_s13, 5120  ;;  %p1641_p6 = scmp.lt.s32.totalorder %s41_s13, %s41_s13 }
  0x2c   :  { %p1637_p5 = scmp.ne.s32.totalorder %s41_s13, %s1636_s21  ;;  %p1642_p7 = scmp.lt.s32.totalorder %s1636_s21, %s1636_s21 }
  0x2e   :  { %p1643_p8 = por %p1642_p7, %p1641_p6 }
  0x30   :  { %p1644_p9 = pnand %p1643_p8, %p1637_p5 }
  0x32   :  { %1647 = shalt.err (!%p1644_p9)
}
  0x33   :  { %s1683_s0 = smov 320   ;;  %s1684_s22 = smov 20  }
  0x34   :  { %46 = dma.hbm_to_vmem [thread:$0]  %s1769_s2, 5120, %s41_s13, [#allocation6], %s1683_s0, %s1683_s0, %s1684_s22  }
  0x35   :  { %1670 = dma.done.wait [#allocation3], 2560  }
  0x36   :  { %1671 = vsyncadd [#allocation3], 4294964736 }
  0x37   :  { %1672 = dma.done.wait [#allocation6], 15360  }
  0x38   :  { %1673 = vsyncadd [#allocation6], 4294951936  ;;  %v1685_v0 = vmov 0   ;;  %v1390_v1 = vld [vmem:[#allocation5 + $0x4] ss:$8 sps:$4 sm:$0xff]   ;;  %v63_v15 = vld [vmem:[#allocation2 + $0x30] sm:$0xff] }
  0x39   :  { %705 = vmatprep.mubr.bf16.mxu1 %v1685_v0  ;;  %v1392_v2 = vld [vmem:[#allocation5] ss:$8 sps:$4 sm:$0xff]   ;;  %567 = vmatprep.subr.bf16.mxu0 %v1390_v1  ;;  %v1393_v3 = vld [vmem:[#allocation5 + $0x14] ss:$8 sps:$4 sm:$0xff]   ;;  %v1395_v4 = vld [vmem:[#allocation5 + $0x10] ss:$8 sps:$4 sm:$0xff]  }
  0x3a   :  { %568 = vmatpush1.bf16.msra.mxu0 %v1392_v2  ;;  %v1396_v5 = vld [vmem:[#allocation5 + $0x24] ss:$8 sps:$4 sm:$0xff]   ;;  %v1398_v6 = vld [vmem:[#allocation5 + $0x20] ss:$8 sps:$4 sm:$0xff]   ;;  %v1399_v7 = vld [vmem:[#allocation5 + $0x34] ss:$8 sps:$4 sm:$0xff]  }
  0x3b   :  { %569 = vmatprep.subr.bf16.mxu0 %v1393_v3  ;;  %v1401_v8 = vld [vmem:[#allocation5 + $0x30] ss:$8 sps:$4 sm:$0xff]   ;;  %v1402_v9 = vld [vmem:[#allocation5 + $0x44] ss:$8 sps:$4 sm:$0xff]   ;;  %v1404_v10 = vld [vmem:[#allocation5 + $0x40] ss:$8 sps:$4 sm:$0xff]  }
  0x3c   :  { %v1405_v11 = vld [vmem:[#allocation5 + $0x54] ss:$8 sps:$4 sm:$0xff]   ;;  %v1407_v12 = vld [vmem:[#allocation5 + $0x50] ss:$8 sps:$4 sm:$0xff]   ;;  %v1408_v13 = vld [vmem:[#allocation5 + $0x64] ss:$8 sps:$4 sm:$0xff]  }
  0x3d   :  { %v58_v14 = vld [vmem:[#allocation2 + $0x8] sm:$0xff]  ;;  %v1411_v18 = vld [vmem:[#allocation5 + $0x74] ss:$8 sps:$4 sm:$0xff]   ;;  %v1413_v19 = vld [vmem:[#allocation5 + $0x70] ss:$8 sps:$4 sm:$0xff]   ;;  %s1686_s2 = smov [#allocation8]  }
  0x3e   :  { %570 = vmatpush1.bf16.msra.mxu0 %v1395_v4  ;;  %v78_v16 = vpack.c.bf16 %v63_v15, %v58_v14  ;;  %v1410_v17 = vld [vmem:[#allocation5 + $0x60] ss:$8 sps:$4 sm:$0xff]   ;;  %v1414_v20 = vld [vmem:[#allocation5 + $0x84] ss:$8 sps:$4 sm:$0xff]   ;;  %v1417_v22 = vld [vmem:[#allocation5 + $0x94] ss:$8 sps:$4 sm:$0xff]  }
  0x3f   :  { %571 = vmatprep.subr.bf16.mxu0 %v1396_v5  ;;  %v1416_v21 = vld [vmem:[#allocation5 + $0x80] ss:$8 sps:$4 sm:$0xff]   ;;  %v1462_v23 = vld [vmem:[#allocation5 + $0x204] ss:$8 sps:$4 sm:$0xff]   ;;  %v1419_v25 = vld [vmem:[#allocation5 + $0x90] ss:$8 sps:$4 sm:$0xff]  }
  0x40   :  { %599 = vmatprep.mubr.bf16.mxu0 %v78_v16  ;;  %v1464_v24 = vld [vmem:[#allocation5 + $0x200] ss:$8 sps:$4 sm:$0xff]   ;;  %v1420_v26 = vld [vmem:[#allocation5 + $0xa4] ss:$8 sps:$4 sm:$0xff]   ;;  %673 = vmatprep.subr.bf16.mxu1 %v1462_v23  ;;  %v1468_v27 = vld [vmem:[#allocation5 + $0x214] ss:$8 sps:$4 sm:$0xff]  }
  0x41   :  { %674 = vmatpush1.bf16.msra.mxu1 %v1464_v24  ;;  %v1470_v28 = vld [vmem:[#allocation5 + $0x210] ss:$8 sps:$4 sm:$0xff]   ;;  %v1422_v29 = vld [vmem:[#allocation5 + $0xa0] ss:$8 sps:$4 sm:$0xff]   ;;  %v1474_v30 = vld [vmem:[#allocation5 + $0x224] ss:$8 sps:$4 sm:$0xff]  }
  0x42   :  { %572 = vmatpush1.bf16.msra.mxu0 %v1398_v6  ;;  %675 = vmatprep.subr.bf16.mxu1 %v1468_v27  ;;  %v1423_v31 = vld [vmem:[#allocation5 + $0xb4] ss:$8 sps:$4 sm:$0xff]   ;;  %v1476_v32 = vld [vmem:[#allocation5 + $0x220] ss:$8 sps:$4 sm:$0xff]   ;;  %v1425_v34 = vld [vmem:[#allocation5 + $0xb0] ss:$8 sps:$4 sm:$0xff]  }
  0x43   :  { %573 = vmatprep.subr.bf16.mxu0 %v1399_v7  ;;  %v1480_v33 = vld [vmem:[#allocation5 + $0x234] ss:$8 sps:$4 sm:$0xff]   ;;  %v1426_v35 = vld [vmem:[#allocation5 + $0xc4] ss:$8 sps:$4 sm:$0xff]   ;;  %v1482_v36 = vld [vmem:[#allocation5 + $0x230] ss:$8 sps:$4 sm:$0xff]  }
  0x44   :  { %v1486_v37 = vld [vmem:[#allocation5 + $0x244] ss:$8 sps:$4 sm:$0xff]   ;;  %v1428_v38 = vld [vmem:[#allocation5 + $0xc0] ss:$8 sps:$4 sm:$0xff]   ;;  %v1429_v39 = vld [vmem:[#allocation5 + $0xd4] ss:$8 sps:$4 sm:$0xff]  }
  0x45   :  { %676 = vmatpush1.bf16.msra.mxu1 %v1470_v28  ;;  %v1488_v40 = vld [vmem:[#allocation5 + $0x240] ss:$8 sps:$4 sm:$0xff]   ;;  %v1492_v41 = vld [vmem:[#allocation5 + $0x254] ss:$8 sps:$4 sm:$0xff]   ;;  %v1431_v42 = vld [vmem:[#allocation5 + $0xd0] ss:$8 sps:$4 sm:$0xff]  }
  0x46   :  { %574 = vmatpush1.bf16.msra.mxu0 %v1401_v8  ;;  %677 = vmatprep.subr.bf16.mxu1 %v1474_v30  ;;  %v1432_v43 = vld [vmem:[#allocation5 + $0xe4] ss:$8 sps:$4 sm:$0xff]   ;;  %v1494_v44 = vld [vmem:[#allocation5 + $0x250] ss:$8 sps:$4 sm:$0xff]   ;;  %v1434_v46 = vld [vmem:[#allocation5 + $0xe0] ss:$8 sps:$4 sm:$0xff]  }
  0x47   :  { %575 = vmatprep.subr.bf16.mxu0 %v1402_v9  ;;  %v1498_v45 = vld [vmem:[#allocation5 + $0x264] ss:$8 sps:$4 sm:$0xff]   ;;  %v1435_v47 = vld [vmem:[#allocation5 + $0xf4] ss:$8 sps:$4 sm:$0xff]   ;;  %v1437_v48 = vld [vmem:[#allocation5 + $0xf0] ss:$8 sps:$4 sm:$0xff]  }
  0x48   :  { %v57_v49 = vld [vmem:[#allocation2] sm:$0xff]  ;;  %v62_v50 = vld [vmem:[#allocation2 + $0x28] sm:$0xff]  ;;  %v68_v53 = vld [vmem:[#allocation2 + $0x58] sm:$0xff]  ;;  %s1196_s25 = sshll.u32 %s1686_s2, 4  ;;  %s1197_s25 = int_to_ptr.vmem [resolvable:$true] %s1196_s25 }
  0x49   :  { %678 = vmatpush1.bf16.msra.mxu1 %v1476_v32  ;;  %v1500_v51 = vld [vmem:[#allocation5 + $0x260] ss:$8 sps:$4 sm:$0xff]   ;;  %v1440_v52 = vld [vmem:[#allocation5 + $0x104] ss:$8 sps:$4 sm:$0xff]   ;;  %v1504_v55 = vld [vmem:[#allocation5 + $0x274] ss:$8 sps:$4 sm:$0xff]   ;;  %v77_v60 = vpack.c.bf16 %v62_v50, %v57_v49  ;;  %p1653_p11 = scmp.lt.s32.totalorder %s1197_s25, %s1197_s25 }
  0x4a   :  { %576 = vmatpush1.bf16.msra.mxu0 %v1404_v10  ;;  %679 = vmatprep.subr.bf16.mxu1 %v1480_v33  ;;  %v73_v54 = vld [vmem:[#allocation2 + $0x80] sm:$0xff]  ;;  %v1506_v56 = vld [vmem:[#allocation5 + $0x270] ss:$8 sps:$4 sm:$0xff]   ;;  %v66_v58 = vld [vmem:[#allocation2 + $0x48] sm:$0xff]  ;;  %s1648_s26 = scalar_lea.vmem %s1197_s25, 2560 }
  0x4b   :  { %577 = vmatprep.subr.bf16.mxu0 %v1405_v11  ;;  %v61_v57 = vld [vmem:[#allocation2 + $0x20] sm:$0xff]  ;;  %v1443_v61 = vld [vmem:[#allocation5 + $0x114] ss:$8 sps:$4 sm:$0xff]   ;;  %v83_v62 = vpack.c.bf16 %v73_v54, %v68_v53  ;;  %v1441_v1 = vld [vmem:[#allocation5 + $0x110] ss:$8 sps:$4 sm:$0xff]   ;;  %p1649_p10 = scmp.ne.s32.totalorder %s1197_s25, %s1648_s26  ;;  %p1654_p12 = scmp.lt.s32.totalorder %s1648_s26, %s1648_s26 }
  0x4c   :  { %v1438_v59 = vld [vmem:[#allocation5 + $0x100] ss:$8 sps:$4 sm:$0xff]   ;;  %v81_v63 = vpack.c.bf16 %v66_v58, %v61_v57  ;;  %v67_v2 = vld [vmem:[#allocation2 + $0x50] sm:$0xff]  ;;  %v72_v3 = vld [vmem:[#allocation2 + $0x78] sm:$0xff] }
  0x4d   :  { %680 = vmatpush1.bf16.msra.mxu1 %v1482_v36  ;;  %v1446_v4 = vld [vmem:[#allocation5 + $0x124] ss:$8 sps:$4 sm:$0xff]   ;;  %v60_v5 = vld [vmem:[#allocation2 + $0x18] sm:$0xff]  ;;  %v71_v7 = vld [vmem:[#allocation2 + $0x70] sm:$0xff]  ;;  %v82_v11 = vpack.c.bf16 %v72_v3, %v67_v2  ;;  %p1655_p13 = por %p1654_p12, %p1653_p11 }
  0x4e   :  { %578 = vmatpush1.bf16.msra.mxu0 %v1407_v12  ;;  %681 = vmatprep.subr.bf16.mxu1 %v1486_v37  ;;  %v65_v6 = vld [vmem:[#allocation2 + $0x40] sm:$0xff]  ;;  %v76_v8 = vld [vmem:[#allocation2 + $0x98] sm:$0xff] }
  0x4f   :  { %579 = vmatprep.subr.bf16.mxu0 %v1408_v13  ;;  %v1444_v9 = vld [vmem:[#allocation5 + $0x120] ss:$8 sps:$4 sm:$0xff]   ;;  %v1449_v10 = vld [vmem:[#allocation5 + $0x134] ss:$8 sps:$4 sm:$0xff]   ;;  %v80_v12 = vpack.c.bf16 %v65_v6, %v60_v5  ;;  %v86_v13 = vpack.c.bf16 %v76_v8, %v71_v7  ;;  %v1447_v14 = vld [vmem:[#allocation5 + $0x130] ss:$8 sps:$4 sm:$0xff]   ;;  %p1656_p0 = pnand %p1655_p13, %p1649_p10 }
  0x50   :  { %v1452_v15 = vld [vmem:[#allocation5 + $0x144] ss:$8 sps:$4 sm:$0xff]   ;;  %v1450_v16 = vld [vmem:[#allocation5 + $0x140] ss:$8 sps:$4 sm:$0xff]   ;;  %v1483_v30 = vld [vmem:[#allocation5 + $0x1b0] ss:$8 sps:$4 sm:$0xff]  }
  0x51   :  { %682 = vmatpush1.bf16.msra.mxu1 %v1488_v40  ;;  %v1467_v23 = vld [vmem:[#allocation5 + $0x184] ss:$8 sps:$4 sm:$0xff]   ;;  %v1465_v24 = vld [vmem:[#allocation5 + $0x180] ss:$8 sps:$4 sm:$0xff]   ;;  %v1497_v33 = vld [vmem:[#allocation5 + $0x1d4] ss:$8 sps:$4 sm:$0xff]  }
  0x52   :  { %580 = vmatpush1.bf16.msra.mxu0 %v1410_v17  ;;  %683 = vmatprep.subr.bf16.mxu1 %v1492_v41  ;;  %v1455_v17 = vld [vmem:[#allocation5 + $0x154] ss:$8 sps:$4 sm:$0xff]   ;;  %v1479_v27 = vld [vmem:[#allocation5 + $0x1a4] ss:$8 sps:$4 sm:$0xff]   ;;  %v1477_v28 = vld [vmem:[#allocation5 + $0x1a0] ss:$8 sps:$4 sm:$0xff]  }
  0x53   :  { %581 = vmatprep.subr.bf16.mxu0 %v1411_v18  ;;  %v1453_v18 = vld [vmem:[#allocation5 + $0x150] ss:$8 sps:$4 sm:$0xff]   ;;  %v1489_v32 = vld [vmem:[#allocation5 + $0x1c0] ss:$8 sps:$4 sm:$0xff]   ;;  %v1509_v37 = vld [vmem:[#allocation5 + $0x1f4] ss:$8 sps:$4 sm:$0xff]  }
  0x54   :  { %v1501_v36 = vld [vmem:[#allocation5 + $0x1e0] ss:$8 sps:$4 sm:$0xff]   ;;  %v64_v40 = vld [vmem:[#allocation2 + $0x38] sm:$0xff]  ;;  %v1516_v53 = vld [vmem:[#allocation7 + $0x50] ss:$20 sps:$4 sm:$0xff]  }
  0x55   :  { %684 = vmatpush1.bf16.msra.mxu1 %v1494_v44  ;;  %v70_v41 = vld [vmem:[#allocation2 + $0x68] sm:$0xff]  ;;  %v1510_v49 = vld [vmem:[#allocation7] ss:$20 sps:$4 sm:$0xff]   ;;  %v1521_v54 = vld [vmem:[#allocation7 + $0x7c] ss:$20 sps:$4 sm:$0xff]  }
  0x56   :  { %582 = vmatpush1.bf16.msra.mxu0 %v1413_v19  ;;  %685 = vmatprep.subr.bf16.mxu1 %v1498_v45  ;;  %v1458_v19 = vld [vmem:[#allocation5 + $0x164] ss:$8 sps:$4 sm:$0xff]   ;;  %v1522_v57 = vld [vmem:[#allocation7 + $0xa0] ss:$20 sps:$4 sm:$0xff]  }
  0x57   :  { %583 = vmatprep.subr.bf16.mxu0 %v1414_v20  ;;  %v1456_v20 = vld [vmem:[#allocation5 + $0x160] ss:$8 sps:$4 sm:$0xff]  }
  0x58   :  { %v69_v45 = vld [vmem:[#allocation2 + $0x60] sm:$0xff] }
  0x59   :  { %686 = vmatpush1.bf16.msra.mxu1 %v1500_v51  ;;  %v1515_v50 = vld [vmem:[#allocation7 + $0x2c] ss:$20 sps:$4 sm:$0xff]   ;;  %v1513_v51 = vld [vmem:[#allocation7 + $0x28] ss:$20 sps:$4 sm:$0xff]  }
  0x5a   :  { %584 = vmatpush1.bf16.msra.mxu0 %v1416_v21  ;;  %687 = vmatprep.subr.bf16.mxu1 %v1504_v55  ;;  %v1461_v21 = vld [vmem:[#allocation5 + $0x174] ss:$8 sps:$4 sm:$0xff]   ;;  %v1519_v55 = vld [vmem:[#allocation7 + $0x78] ss:$20 sps:$4 sm:$0xff]  }
  0x5b   :  { %585 = vmatprep.subr.bf16.mxu0 %v1417_v22  ;;  %v1459_v22 = vld [vmem:[#allocation5 + $0x170] ss:$8 sps:$4 sm:$0xff]   ;;  %v1527_v58 = vld [vmem:[#allocation7 + $0xcc] ss:$20 sps:$4 sm:$0xff]  }
  0x5d   :  { %688 = vmatpush1.bf16.msra.mxu1 %v1506_v56  ;;  %v1524_v56 = vld [vmem:[#allocation7 + $0xa4] ss:$20 sps:$4 sm:$0xff]  }
  0x5e   :  { %586 = vmatpush1.bf16.msra.mxu0 %v1419_v25  ;;  %v1473_v25 = vld [vmem:[#allocation5 + $0x194] ss:$8 sps:$4 sm:$0xff]  }
  0x5f   :  { %587 = vmatprep.subr.bf16.mxu0 %v1420_v26  ;;  %v1471_v26 = vld [vmem:[#allocation5 + $0x190] ss:$8 sps:$4 sm:$0xff]  }
  0x60   :  { %706 = vmatmul.mubr.bf16.vlgmr.msra.gmra.mrb[0].mxu1 %v81_v63  ;;  %v1531_v63 = vld [vmem:[#allocation7 + $0x118] ss:$20 sps:$4 sm:$0xff]  }
  0x61   :  { %715 = vmatprep.mubr.bf16.mxu1 %v1685_v0 }
  0x62   :  { %588 = vmatpush1.bf16.msra.mxu0 %v1422_v29  ;;  %v1485_v29 = vld [vmem:[#allocation5 + $0x1b4] ss:$8 sps:$4 sm:$0xff]  }
  0x63   :  { %589 = vmatprep.subr.bf16.mxu0 %v1423_v31  ;;  %v1491_v31 = vld [vmem:[#allocation5 + $0x1c4] ss:$8 sps:$4 sm:$0xff]  }
  0x66   :  { %590 = vmatpush1.bf16.msra.mxu0 %v1425_v34  ;;  %v1495_v34 = vld [vmem:[#allocation5 + $0x1d0] ss:$8 sps:$4 sm:$0xff]  }
  0x67   :  { %591 = vmatprep.subr.bf16.mxu0 %v1426_v35  ;;  %v1503_v35 = vld [vmem:[#allocation5 + $0x1e4] ss:$8 sps:$4 sm:$0xff]  }
  0x68   :  { %716 = vmatmul.mubr.bf16.gmra.mrb[4].mxu1 %v86_v13 }
  0x69   :  { %1048 = vmatprep.mubr.bf16.mxu1 %v1685_v0 }
  0x6a   :  { %592 = vmatpush1.bf16.msra.mxu0 %v1428_v38  ;;  %v1507_v38 = vld [vmem:[#allocation5 + $0x1f0] ss:$8 sps:$4 sm:$0xff]  }
  0x6b   :  { %593 = vmatprep.subr.bf16.mxu0 %v1429_v39  ;;  %v59_v39 = vld [vmem:[#allocation2 + $0x10] sm:$0xff] }
  0x6e   :  { %594 = vmatpush1.bf16.msra.mxu0 %v1431_v42  ;;  %v75_v42 = vld [vmem:[#allocation2 + $0x90] sm:$0xff] }
  0x6f   :  { %595 = vmatprep.subr.bf16.mxu0 %v1432_v43  ;;  %v79_v43 = vpack.c.bf16 %v64_v40, %v59_v39  ;;  %v85_v44 = vpack.c.bf16 %v75_v42, %v70_v41 }
  0x72   :  { %596 = vmatpush1.bf16.msra.mxu0 %v1434_v46  ;;  %v74_v46 = vld [vmem:[#allocation2 + $0x88] sm:$0xff] }
  0x73   :  { %597 = vmatprep.subr.bf16.mxu0 %v1435_v47  ;;  %v84_v47 = vpack.c.bf16 %v74_v46, %v69_v45  ;;  %v1539_v46 = vld [vmem:[#allocation7 + $0x34] ss:$20 sps:$4 sm:$0xff]  }
  0x76   :  { %598 = vmatpush1.bf16.msra.mxu0 %v1437_v48  ;;  %v1512_v48 = vld [vmem:[#allocation7 + $0x4] ss:$20 sps:$4 sm:$0xff]  }
  0x77   :  { %620 = vmatprep.subr.bf16.mxu0 %v1440_v52  ;;  %1016 = vmatprep.subr.bf16.mxu1 %v1512_v48  ;;  %v1518_v52 = vld [vmem:[#allocation7 + $0x54] ss:$20 sps:$4 sm:$0xff]  }
  0x78   :  { %1017 = vmatpush1.bf16.msra.mxu1 %v1510_v49 }
  0x79   :  { %600 = vmatmul.mubr.bf16.vlgmr.msra.gmra.mrb[0].mxu0 %v77_v60  ;;  %1018 = vmatprep.subr.bf16.mxu1 %v1515_v50  ;;  %v1530_v60 = vld [vmem:[#allocation7 + $0xf4] ss:$20 sps:$4 sm:$0xff]   ;;  %v1537_v50 = vld [vmem:[#allocation7 + $0x30] ss:$20 sps:$4 sm:$0xff]  }
  0x7a   :  { %621 = vmatpush1.bf16.msra.mxu0 %v1438_v59  ;;  %609 = vmatprep.mubr.bf16.mxu0 %v83_v62  ;;  %v1525_v59 = vld [vmem:[#allocation7 + $0xc8] ss:$20 sps:$4 sm:$0xff]  }
  0x7b   :  { %622 = vmatprep.subr.bf16.mxu0 %v1443_v61  ;;  %v1528_v61 = vld [vmem:[#allocation7 + $0xf0] ss:$20 sps:$4 sm:$0xff]  }
  0x7c   :  { %1019 = vmatpush1.bf16.msra.mxu1 %v1513_v51  ;;  %v1533_v62 = vld [vmem:[#allocation7 + $0x11c] ss:$20 sps:$4 sm:$0xff]  }
  0x7d   :  { %1020 = vmatprep.subr.bf16.mxu1 %v1518_v52 }
  0x7e   :  { %623 = vmatpush1.bf16.msra.mxu0 %v1441_v1  ;;  %v1536_v1 = vld [vmem:[#allocation7 + $0xc] ss:$20 sps:$4 sm:$0xff]  }
  0x7f   :  { %624 = vmatprep.subr.bf16.mxu0 %v1446_v4 }
  0x80   :  { %1021 = vmatpush1.bf16.msra.mxu1 %v1516_v53  ;;  %v1542_v53 = vld [vmem:[#allocation7 + $0x5c] ss:$20 sps:$4 sm:$0xff]  }
  0x81   :  { %610 = vmatmul.mubr.bf16.gmra.mrb[4].mxu0 %v82_v11  ;;  %1022 = vmatprep.subr.bf16.mxu1 %v1521_v54 }
  0x82   :  { %625 = vmatpush1.bf16.msra.mxu0 %v1444_v9  ;;  %652 = vmatprep.mubr.bf16.mxu0 %v80_v12 }
  0x83   :  { %626 = vmatprep.subr.bf16.mxu0 %v1449_v10 }
  0x84   :  { %1023 = vmatpush1.bf16.msra.mxu1 %v1519_v55  ;;  %v1540_v55 = vld [vmem:[#allocation7 + $0x58] ss:$20 sps:$4 sm:$0xff]  }
  0x85   :  { %1024 = vmatprep.subr.bf16.mxu1 %v1524_v56 }
  0x86   :  { %627 = vmatpush1.bf16.msra.mxu0 %v1447_v14 }
  0x87   :  { %628 = vmatprep.subr.bf16.mxu0 %v1452_v15 }
  0x88   :  { %1025 = vmatpush1.bf16.msra.mxu1 %v1522_v57  ;;  %v1545_v57 = vld [vmem:[#allocation7 + $0x84] ss:$20 sps:$4 sm:$0xff]  }
  0x89   :  { %1026 = vmatprep.subr.bf16.mxu1 %v1527_v58  ;;  %v1543_v58 = vld [vmem:[#allocation7 + $0x80] ss:$20 sps:$4 sm:$0xff]  }
  0x8a   :  { %629 = vmatpush1.bf16.msra.mxu0 %v1450_v16 }
  0x8b   :  { %630 = vmatprep.subr.bf16.mxu0 %v1455_v17 }
  0x8c   :  { %1027 = vmatpush1.bf16.msra.mxu1 %v1525_v59  ;;  %v1548_v59 = vld [vmem:[#allocation7 + $0xac] ss:$20 sps:$4 sm:$0xff]  }
  0x8d   :  { %1028 = vmatprep.subr.bf16.mxu1 %v1530_v60  ;;  %v1546_v60 = vld [vmem:[#allocation7 + $0xa8] ss:$20 sps:$4 sm:$0xff]  }
  0x8e   :  { %631 = vmatpush1.bf16.msra.mxu0 %v1453_v18 }
  0x8f   :  { %632 = vmatprep.subr.bf16.mxu0 %v1458_v19 }
  0x90   :  { %1029 = vmatpush1.bf16.msra.mxu1 %v1528_v61  ;;  %v1551_v61 = vld [vmem:[#allocation7 + $0xd4] ss:$20 sps:$4 sm:$0xff]  }
  0x91   :  { %1030 = vmatprep.subr.bf16.mxu1 %v1533_v62  ;;  %v1549_v62 = vld [vmem:[#allocation7 + $0xd0] ss:$20 sps:$4 sm:$0xff]  }
  0x92   :  { %633 = vmatpush1.bf16.msra.mxu0 %v1456_v20 }
  0x93   :  { %634 = vmatprep.subr.bf16.mxu0 %v1461_v21 }
  0x94   :  { %1031 = vmatpush1.bf16.msra.mxu1 %v1531_v63  ;;  %v1554_v63 = vld [vmem:[#allocation7 + $0xfc] ss:$20 sps:$4 sm:$0xff]  }
  0x95   :  { %1069 = vmatprep.subr.bf16.mxu1 %v1536_v1  ;;  %v1552_v1 = vld [vmem:[#allocation7 + $0xf8] ss:$20 sps:$4 sm:$0xff]  }
  0x96   :  { %635 = vmatpush1.bf16.msra.mxu0 %v1459_v22 }
  0x97   :  { %636 = vmatprep.subr.bf16.mxu0 %v1467_v23 }
  0x9a   :  { %637 = vmatpush1.bf16.msra.mxu0 %v1465_v24 }
  0x9b   :  { %638 = vmatprep.subr.bf16.mxu0 %v1473_v25 }
  0x9e   :  { %639 = vmatpush1.bf16.msra.mxu0 %v1471_v26 }
  0x9f   :  { %640 = vmatprep.subr.bf16.mxu0 %v1479_v27 }
  0xa2   :  { %641 = vmatpush1.bf16.msra.mxu0 %v1477_v28 }
  0xa3   :  { %642 = vmatprep.subr.bf16.mxu0 %v1485_v29 }
  0xa6   :  { %643 = vmatpush1.bf16.msra.mxu0 %v1483_v30 }
  0xa7   :  { %644 = vmatprep.subr.bf16.mxu0 %v1491_v31 }
  0xaa   :  { %645 = vmatpush1.bf16.msra.mxu0 %v1489_v32 }
  0xab   :  { %646 = vmatprep.subr.bf16.mxu0 %v1497_v33 }
  0xae   :  { %647 = vmatpush1.bf16.msra.mxu0 %v1495_v34 }
  0xaf   :  { %648 = vmatprep.subr.bf16.mxu0 %v1503_v35 }
  0xb2   :  { %649 = vmatpush1.bf16.msra.mxu0 %v1501_v36 }
  0xb3   :  { %650 = vmatprep.subr.bf16.mxu0 %v1509_v37 }
  0xb6   :  { %651 = vmatpush1.bf16.msra.mxu0 %v1507_v38 }
  0xb9   :  { %653 = vmatmul.mubr.bf16.vlgmr.msra.gmra.mrb[0].mxu0 %v79_v43 }
  0xba   :  { %662 = vmatprep.mubr.bf16.mxu0 %v85_v44  ;;  %v1534_v44 = vld [vmem:[#allocation7 + $0x8] ss:$20 sps:$4 sm:$0xff]  }
  0xc1   :  { %663 = vmatmul.mubr.bf16.gmra.mrb[4].mxu0 %v84_v47 }
 0x133   :  { %v707_v2 = vpop.f32.mrb[0].mxu1 }
 0x134   :  { %v709_v3 = vpop.f32.mrb[1].mxu1 }
 0x135   :  { %v711_v4 = vpop.f32.mrb[2].mxu1 }
 0x136   :  { %v713_v5 = vpop.f32.mrb[3].mxu1 }
 0x13b   :  { %v717_v6 = vpop.f32.mrb[4].mxu1 }
 0x13c   :  { %v719_v7 = vpop.f32.mrb[5].mxu1 }
 0x13d   :  { %v721_v8 = vpop.f32.mrb[6].mxu1 }
 0x13e   :  { %v723_v9 = vpop.f32.mrb[7].mxu1 }
 0x18c   :  { %v654_v10 = vpop.f32.mrb[0].mxu0 }
 0x18d   :  { %v1363_v11 = vadd.f32 %v707_v2, %v654_v10  ;;  %v656_v12 = vpop.f32.mrb[1].mxu0  ;;  %v1557_v2 = vld [vmem:[#allocation7 + $0x124] ss:$20 sps:$4 sm:$0xff]   ;;  %v1564_v10 = vld [vmem:[#allocation7 + $0x100] ss:$20 sps:$4 sm:$0xff]  }
 0x18e   :  { %v1364_v13 = vadd.f32 %v709_v3, %v656_v12  ;;  %v658_v14 = vpop.f32.mrb[2].mxu0  ;;  %v1555_v3 = vld [vmem:[#allocation7 + $0x120] ss:$20 sps:$4 sm:$0xff]  }
 0x18f   :  { %v1289_v15 = vmul.f32 -1.442695, %v1363_v11  ;;  %v1365_v16 = vadd.f32 %v711_v4, %v658_v14  ;;  %v660_v17 = vpop.f32.mrb[3].mxu0  ;;  %v1558_v4 = vld [vmem:[#allocation7 + $0x10] ss:$20 sps:$4 sm:$0xff]  }
 0x190   :  { %v1366_v18 = vadd.f32 %v713_v5, %v660_v17  ;;  %v1559_v5 = vld [vmem:[#allocation7 + $0x38] ss:$20 sps:$4 sm:$0xff]  }
 0x191   :  { %1566 = vpow2.f32 %v1289_v15  ;;  %v1290_v19 = vmul.f32 -1.442695, %v1365_v16 }
 0x193   :  { %1568 = vpow2.f32 %v1290_v19 }
 0x194   :  { %v664_v20 = vpop.f32.mrb[4].mxu0 }
 0x195   :  { %v1367_v21 = vadd.f32 %v717_v6, %v664_v20  ;;  %v666_v22 = vpop.f32.mrb[5].mxu0  ;;  %v1560_v6 = vld [vmem:[#allocation7 + $0x60] ss:$20 sps:$4 sm:$0xff]  }
 0x196   :  { %v1368_v23 = vadd.f32 %v719_v7, %v666_v22  ;;  %v668_v24 = vpop.f32.mrb[6].mxu0  ;;  %v1561_v7 = vld [vmem:[#allocation7 + $0x88] ss:$20 sps:$4 sm:$0xff]  }
 0x197   :  { %v1291_v25 = vmul.f32 -1.442695, %v1367_v21  ;;  %v1369_v26 = vadd.f32 %v721_v8, %v668_v24  ;;  %v670_v27 = vpop.f32.mrb[7].mxu0  ;;  %v1562_v8 = vld [vmem:[#allocation7 + $0xb0] ss:$20 sps:$4 sm:$0xff]  }
 0x198   :  { %v1370_v28 = vadd.f32 %v723_v9, %v670_v27  ;;  %v1563_v9 = vld [vmem:[#allocation7 + $0xd8] ss:$20 sps:$4 sm:$0xff]  }
 0x199   :  { %1570 = vpow2.f32 %v1291_v25  ;;  %v1292_v29 = vmul.f32 -1.442695, %v1369_v26 }
 0x19b   :  { %v1567_v30 = vpop.eup %1566  ;;  %1572 = vpow2.f32 %v1292_v29 }
 0x19c   :  { %v738_v31 = vadd.f32 1.0, %v1567_v30 }
 0x19d   :  { %v1569_v32 = vpop.eup %1568 }
 0x19e   :  { %1574 = vrcp.f32 %v738_v31  ;;  %v739_v33 = vadd.f32 1.0, %v1569_v32 }
 0x1a0   :  { %1576 = vrcp.f32 %v739_v33 }
 0x1a3   :  { %v1571_v34 = vpop.eup %1570 }
 0x1a4   :  { %v740_v35 = vadd.f32 1.0, %v1571_v34 }
 0x1a5   :  { %v1573_v36 = vpop.eup %1572 }
 0x1a6   :  { %1578 = vrcp.f32 %v740_v35  ;;  %v741_v37 = vadd.f32 1.0, %v1573_v36 }
 0x1a8   :  { %v1575_v38 = vpop.eup %1574  ;;  %1580 = vrcp.f32 %v741_v37 }
 0x1a9   :  { %v750_v39 = vmul.f32 %v1575_v38, %v1363_v11  ;;  %v1565_v11 = vld [vmem:[#allocation7 + $0x128] ss:$20 sps:$4 sm:$0xff]  }
 0x1aa   :  { %v1577_v40 = vpop.eup %1576 }
 0x1ab   :  { %v754_v41 = vmul.f32 %v1364_v13, %v750_v39  ;;  %v751_v42 = vmul.f32 %v1577_v40, %v1365_v16 }
 0x1ad   :  { %v755_v43 = vmul.f32 %v1366_v18, %v751_v42 }
 0x1af   :  { %v758_v45 = vpack.c.bf16 %v755_v43, %v754_v41 }
 0x1b0   :  { %v1579_v47 = vpop.eup %1578 }
 0x1b1   :  { %v752_v48 = vmul.f32 %v1579_v47, %v1367_v21  ;;  %1049 = vmatmul.mubr.bf16.vlgmr.msra.gmra.mrb[8].mxu1 %v758_v45 }
 0x1b2   :  { %v1581_v49 = vpop.eup %1580  ;;  %1070 = vmatpush1.bf16.msra.mxu1 %v1534_v44  ;;  %1058 = vmatprep.mubr.bf16.mxu1 %v1685_v0 }
 0x1b3   :  { %v756_v51 = vmul.f32 %v1368_v23, %v752_v48  ;;  %v753_v52 = vmul.f32 %v1581_v49, %v1369_v26  ;;  %1071 = vmatprep.subr.bf16.mxu1 %v1539_v46 }
 0x1b5   :  { %v757_v54 = vmul.f32 %v1370_v28, %v753_v52 }
 0x1b6   :  { %1072 = vmatpush1.bf16.msra.mxu1 %v1537_v50 }
 0x1b7   :  { %1073 = vmatprep.subr.bf16.mxu1 %v1542_v53  ;;  %v759_v56 = vpack.c.bf16 %v757_v54, %v756_v51 }
 0x1b9   :  { %1059 = vmatmul.mubr.bf16.gmra.mrb[12].mxu1 %v759_v56 }
 0x1ba   :  { %1074 = vmatpush1.bf16.msra.mxu1 %v1540_v55  ;;  %1101 = vmatprep.mubr.bf16.mxu1 %v1685_v0 }
 0x1bb   :  { %1075 = vmatprep.subr.bf16.mxu1 %v1545_v57 }
 0x1be   :  { %1076 = vmatpush1.bf16.msra.mxu1 %v1543_v58 }
 0x1bf   :  { %1077 = vmatprep.subr.bf16.mxu1 %v1548_v59 }
 0x1c2   :  { %1078 = vmatpush1.bf16.msra.mxu1 %v1546_v60 }
 0x1c3   :  { %1079 = vmatprep.subr.bf16.mxu1 %v1551_v61 }
 0x1c6   :  { %1080 = vmatpush1.bf16.msra.mxu1 %v1549_v62 }
 0x1c7   :  { %1081 = vmatprep.subr.bf16.mxu1 %v1554_v63 }
 0x1ca   :  { %1082 = vmatpush1.bf16.msra.mxu1 %v1552_v1 }
 0x1cb   :  { %1083 = vmatprep.subr.bf16.mxu1 %v1557_v2 }
 0x1ce   :  { %1084 = vmatpush1.bf16.msra.mxu1 %v1555_v3 }
 0x1cf   :  { %1343 = vmatprep.subr.bf16.mxu1 %v1558_v4 }
 0x1d1   :  { %1102 = vmatmul.mubr.bf16.vlgmr.msra.gmra.mrb[16].mxu1 %v758_v45 }
 0x1d2   :  { %1344 = vmatpush3.bf16.msra.mxu1 %v1558_v4  ;;  %1111 = vmatprep.mubr.bf16.mxu1 %v1685_v0 }
 0x1d3   :  { %1345 = vmatprep.subr.bf16.mxu1 %v1559_v5 }
 0x1d6   :  { %1346 = vmatpush3.bf16.msra.mxu1 %v1559_v5 }
 0x1d7   :  { %1347 = vmatprep.subr.bf16.mxu1 %v1560_v6 }
 0x1d9   :  { %1112 = vmatmul.mubr.bf16.gmra.mrb[20].mxu1 %v759_v56 }
 0x1da   :  { %1348 = vmatpush3.bf16.msra.mxu1 %v1560_v6  ;;  %1359 = vmatprep.mubr.bf16.mxu1 %v758_v45 }
 0x1db   :  { %1349 = vmatprep.subr.bf16.mxu1 %v1561_v7 }
 0x1de   :  { %1350 = vmatpush3.bf16.msra.mxu1 %v1561_v7 }
 0x1df   :  { %1351 = vmatprep.subr.bf16.mxu1 %v1562_v8 }
 0x1e2   :  { %1352 = vmatpush3.bf16.msra.mxu1 %v1562_v8 }
 0x1e3   :  { %1353 = vmatprep.subr.bf16.mxu1 %v1563_v9 }
 0x1e6   :  { %1354 = vmatpush3.bf16.msra.mxu1 %v1563_v9 }
 0x1e7   :  { %1355 = vmatprep.subr.bf16.mxu1 %v1564_v10 }
 0x1ea   :  { %1356 = vmatpush3.bf16.msra.mxu1 %v1564_v10 }
 0x1eb   :  { %1357 = vmatprep.subr.bf16.mxu1 %v1565_v11 }
 0x1ee   :  { %1358 = vmatpush3.bf16.msra.mxu1 %v1565_v11 }
 0x1f1   :  { %1360 = vmatmul.mubr.bf16.vlgmr.msra.gmra.mrb[24].mxu1 %v759_v56 }
 0x284   :  { %v1050_v0 = vpop.f32.mrb[8].mxu1 }
 0x285   :  { %1171 = vst [vmem:[#allocation8] sm:$0xff] %v1050_v0  ;;  %v1052_v12 = vpop.f32.mrb[9].mxu1 }
 0x286   :  { %1172 = vst [vmem:[#allocation8 + $0x8] sm:$0xff] %v1052_v12  ;;  %v1054_v13 = vpop.f32.mrb[10].mxu1 }
 0x287   :  { %1176 = vst [vmem:[#allocation8 + $0x28] sm:$0xff] %v1054_v13  ;;  %v1056_v14 = vpop.f32.mrb[11].mxu1 }
 0x288   :  { %1177 = vst [vmem:[#allocation8 + $0x30] sm:$0xff] %v1056_v14 }
 0x28c   :  { %v1060_v15 = vpop.f32.mrb[12].mxu1 }
 0x28d   :  { %1181 = vst [vmem:[#allocation8 + $0x50] sm:$0xff] %v1060_v15  ;;  %v1062_v16 = vpop.f32.mrb[13].mxu1 }
 0x28e   :  { %1182 = vst [vmem:[#allocation8 + $0x58] sm:$0xff] %v1062_v16  ;;  %v1064_v17 = vpop.f32.mrb[14].mxu1 }
 0x28f   :  { %1186 = vst [vmem:[#allocation8 + $0x78] sm:$0xff] %v1064_v17  ;;  %v1066_v18 = vpop.f32.mrb[15].mxu1 }
 0x290   :  { %1187 = vst [vmem:[#allocation8 + $0x80] sm:$0xff] %v1066_v18 }
 0x2a4   :  { %v1103_v19 = vpop.f32.mrb[16].mxu1 }
 0x2a5   :  { %1173 = vst [vmem:[#allocation8 + $0x10] sm:$0xff] %v1103_v19  ;;  %v1105_v20 = vpop.f32.mrb[17].mxu1 }
 0x2a6   :  { %1174 = vst [vmem:[#allocation8 + $0x18] sm:$0xff] %v1105_v20  ;;  %v1107_v21 = vpop.f32.mrb[18].mxu1 }
 0x2a7   :  { %1178 = vst [vmem:[#allocation8 + $0x38] sm:$0xff] %v1107_v21  ;;  %v1109_v22 = vpop.f32.mrb[19].mxu1 }
 0x2a8   :  { %1179 = vst [vmem:[#allocation8 + $0x40] sm:$0xff] %v1109_v22 }
 0x2ac   :  { %v1113_v23 = vpop.f32.mrb[20].mxu1 }
 0x2ad   :  { %1183 = vst [vmem:[#allocation8 + $0x60] sm:$0xff] %v1113_v23  ;;  %v1115_v24 = vpop.f32.mrb[21].mxu1 }
 0x2ae   :  { %1184 = vst [vmem:[#allocation8 + $0x68] sm:$0xff] %v1115_v24  ;;  %v1117_v25 = vpop.f32.mrb[22].mxu1 }
 0x2af   :  { %1188 = vst [vmem:[#allocation8 + $0x88] sm:$0xff] %v1117_v25  ;;  %v1119_v26 = vpop.f32.mrb[23].mxu1 }
 0x2b0   :  { %1189 = vst [vmem:[#allocation8 + $0x90] sm:$0xff] %v1119_v26 }
 0x2c4   :  { %v1361_v27 = vpop.f32.mrb[24].mxu1 }
 0x2c5   :  { %1185 = vst [vmem:[#allocation8 + $0x70] sm:$0xff] %v1361_v27  ;;  %v1156_v28 = vpop.f32.mrb[25].mxu1 }
 0x2c6   :  { %1175 = vst [vmem:[#allocation8 + $0x20] sm:$0xff] %v1156_v28  ;;  %v1362_v29 = vpop.f32.mrb[26].mxu1 }
 0x2c7   :  { %1190 = vst [vmem:[#allocation8 + $0x98] sm:$0xff] %v1362_v29  ;;  %v1159_v30 = vpop.f32.mrb[27].mxu1 }
 0x2c8   :  { %1180 = vst [vmem:[#allocation8 + $0x48] sm:$0xff] %v1159_v30 }
 0x2c9   :  { %1659 = shalt.err (!%p1656_p0)
}
 0x2ca   :  { %s1660_s29 = scalar_lea.hbm %s1770_s3, 2560 }
 0x2cb   :  { %p1661_p1 = scmp.ne.s32.totalorder %s1770_s3, %s1660_s29  ;;  %p1664_p2 = scmp.lt.u32.totalorder %s1660_s29, %s1770_s3 }
 0x2cd   :  { %p1666_p3 = pnand %p1664_p2, %p1661_p1 }
 0x2cf   :  { %1669 = shalt.err (!%p1666_p3)
}
 0x2d0   :  { %1202 = dma.vmem_to_hbm [thread:$0]  %s1197_s25, 2560, %s1770_s3, [#allocation4], %s1680_s1, %s1680_s1, %s1681_s9  }
 0x2d1   :  { %1674 = dma.done.wait [#allocation4], 2560  }
 0x2d2   :  { %1675 = vsyncadd [#allocation4], 4294964736 }
 0x2d3   :  { %1206 = vsyncpa [#allocation3], 1 }
 0x2d4   :  { %1207 = vsyncpa [#allocation6], 1 }
 0x2d5   :  { %1208 = vsyncpa [#allocation4], 1 }

</bundles_post_ra>
